<compile_context>
chip_gen: v7x
topology: tpu7x:2x2x1
jax: 0.10.0
libtpu: 0.0.40
codegen_flags: <defaults>
</compile_context>

<pallas_src>
import functools

import jax
import jax.numpy as jnp
from jax.experimental import pallas as pl
from jax.experimental.pallas import tpu as pltpu


# ---------------------------------------------------------------------------
# Small helpers
# ---------------------------------------------------------------------------

def _round_up(x, m):
    return (x + m - 1) // m * m


def _pad_axis(a, axis, target):
    pad = target - a.shape[axis]
    if pad == 0:
        return a
    widths = [(0, 0)] * a.ndim
    widths[axis] = (0, pad)
    return jnp.pad(a, widths)


# ---------------------------------------------------------------------------
# Pallas kernels
# ---------------------------------------------------------------------------

def _conv_bn_relu_kernel(p_ref, w_ref, scale_ref, bias_ref, o_ref):
    # (TM, Kp) @ (Kp, Cp) on the MXU (bf16 in, f32 acc), then folded-BN affine
    # + ReLU on the VPU in f32, store in the output dtype (bf16).
    acc = jnp.dot(p_ref[...], w_ref[...], preferred_element_type=jnp.float32)
    y = jnp.maximum(acc * scale_ref[...] + bias_ref[...], 0.0)
    o_ref[...] = y.astype(o_ref.dtype)


def _conv_bn_relu_pool_kernel(p_ref, w_ref, scale_ref, bias_ref, o_ref,
                              acc_ref, *, ts, s_valid, needs_mask):
    # Fused: conv-as-matmul + BN + ReLU + global average pool over the spatial
    # grid axis (axis 1, "arbitrary"/reduction).  acc_ref is a (1, Cp) f32
    # accumulator resident in VMEM across the spatial tiles of one batch row.
    s = pl.program_id(1)

    @pl.when(s == 0)
    def _():
        acc_ref[...] = jnp.zeros_like(acc_ref)

    y = jnp.dot(p_ref[0], w_ref[...], preferred_element_type=jnp.float32)
    y = jnp.maximum(y * scale_ref[...] + bias_ref[...], 0.0)        # (ts, Cp)
    if needs_mask:  # mask spatial rows that are only zero-padding
        row = s * ts + jax.lax.broadcasted_iota(jnp.int32, (ts, 1), 0)
        y = jnp.where(row < s_valid, y, 0.0)
    acc_ref[...] += jnp.sum(y, axis=0, keepdims=True)

    @pl.when(s == pl.num_programs(1) - 1)
    def _():
        o_ref[...] = (acc_ref[...] * (1.0 / s_valid)).reshape(o_ref.shape)


# ---------------------------------------------------------------------------
# Pallas wrappers
# ---------------------------------------------------------------------------

def conv_bn_relu_tiled(patches, w_mat, scale, bias, *, tm=256,
                       out_dtype=jnp.bfloat16):
    """(M, K) @ (K, Cout) conv-as-matmul + folded BN + ReLU, tiled over M.

    K and Cout are zero-padded to multiples of 128 (lane-dense MXU/VPU/store);
    padding is stripped from the returned array.
    """
    M, K = patches.shape
    _, Cout = w_mat.shape
    Kp = _round_up(K, 128)
    Cp = _round_up(Cout, 128)
    tm = min(tm, _round_up(M, 8))
    Mp = _round_up(M, tm)

    p = _pad_axis(_pad_axis(patches.astype(jnp.bfloat16), 1, Kp), 0, Mp)
    w = _pad_axis(_pad_axis(w_mat.astype(jnp.bfloat16), 0, Kp), 1, Cp)
    sc = _pad_axis(scale.astype(jnp.float32), 1, Cp)
    bi = _pad_axis(bias.astype(jnp.float32), 1, Cp)

    out = pl.pallas_call(
        _conv_bn_relu_kernel,
        out_shape=jax.ShapeDtypeStruct((Mp, Cp), out_dtype),
        grid=(Mp // tm,),
        in_specs=[
            pl.BlockSpec((tm, Kp), lambda i: (i, 0)),
            pl.BlockSpec((Kp, Cp), lambda i: (0, 0)),
            pl.BlockSpec((1, Cp), lambda i: (0, 0)),
            pl.BlockSpec((1, Cp), lambda i: (0, 0)),
        ],
        out_specs=pl.BlockSpec((tm, Cp), lambda i: (i, 0)),
        compiler_params=pltpu.CompilerParams(
            dimension_semantics=("parallel",)),
    )(p, w, sc, bi)
    return out[:M, :Cout]


def conv_bn_relu_avgpool(patches_bsk, w_mat, scale, bias, *, ts=256):
    """Fused conv-as-matmul + BN + ReLU + global average pool.

    patches_bsk: (B, S, K) im2col patches of the second conv (S = Ho*Wo).
    Returns (B, Cout) f32 pooled features (forward_head(pre_logits=True)).
    """
    B, S, K = patches_bsk.shape
    _, Cout = w_mat.shape
    Kp = _round_up(K, 128)
    Cp = _round_up(Cout, 128)
    ts = min(ts, _round_up(S, 8))
    Sp = _round_up(S, ts)

    p = _pad_axis(_pad_axis(patches_bsk.astype(jnp.bfloat16), 2, Kp), 1, Sp)
    w = _pad_axis(_pad_axis(w_mat.astype(jnp.bfloat16), 0, Kp), 1, Cp)
    sc = _pad_axis(scale.astype(jnp.float32), 1, Cp)
    bi = _pad_axis(bias.astype(jnp.float32), 1, Cp)

    kernel = functools.partial(_conv_bn_relu_pool_kernel,
                               ts=ts, s_valid=S, needs_mask=(Sp != S))

    out = pl.pallas_call(
        kernel,
        out_shape=jax.ShapeDtypeStruct((B, 1, Cp), jnp.float32),
        grid=(B, Sp // ts),
        in_specs=[
            pl.BlockSpec((1, ts, Kp), lambda b, s: (b, s, 0)),
            pl.BlockSpec((Kp, Cp), lambda b, s: (0, 0)),
            pl.BlockSpec((1, Cp), lambda b, s: (0, 0)),
            pl.BlockSpec((1, Cp), lambda b, s: (0, 0)),
        ],
        out_specs=pl.BlockSpec((1, 1, Cp), lambda b, s: (b, 0, 0)),
        scratch_shapes=[pltpu.VMEM((1, Cp), jnp.float32)],
        compiler_params=pltpu.CompilerParams(
            dimension_semantics=("parallel", "arbitrary")),
    )(p, w, sc, bi)
    return out[:, 0, :Cout]


# ---------------------------------------------------------------------------
# Glue: im2col, BN folding, parameter construction (plain JAX)
# ---------------------------------------------------------------------------

def im2col_nhwc(x_nhwc, kh, kw, stride, pad):
    """Extract conv patches. Returns (B*Ho*Wo, kh*kw*Cin), Ho, Wo.

    K ordering is (dy, dx, cin) — matches weight fold below.  Keeps dtype of
    x_nhwc (bf16 here) so the 9x patch tensor is half the bytes.
    """
    x = jnp.pad(x_nhwc, ((0, 0), (pad, pad), (pad, pad), (0, 0)))
    B, Hp, Wp, C = x.shape
    Ho = (Hp - kh) // stride + 1
    Wo = (Wp - kw) // stride + 1
    cols = []
    for dy in range(kh):
        for dx in range(kw):
            cols.append(x[:, dy:dy + Ho * stride:stride,
                          dx:dx + Wo * stride:stride, :])
    patches = jnp.concatenate(cols, axis=-1)          # (B, Ho, Wo, kh*kw*C)
    return patches.reshape(B * Ho * Wo, kh * kw * C), Ho, Wo


def fold_conv_weight(w_oihw):
    """PyTorch conv weight (Cout, Cin, kh, kw) -> (kh*kw*Cin, Cout) matching
    the (dy, dx, cin) patch ordering."""
    Cout, Cin, kh, kw = w_oihw.shape
    return jnp.transpose(w_oihw, (2, 3, 1, 0)).reshape(kh * kw * Cin, Cout)


def fold_bn(gamma, beta, mean, var, eps=1e-5):
    scale = gamma / jnp.sqrt(var + eps)
    bias = beta - mean * scale
    return scale.reshape(1, -1), bias.reshape(1, -1)


def make_params(key, cin, c1, c2, k=3):
    ks = jax.random.split(key, 10)
    p = {}
    p["w1"] = jax.random.normal(ks[0], (c1, cin, k, k), jnp.float32) * 0.1
    p["g1"] = 1.0 + 0.1 * jax.random.normal(ks[1], (c1,), jnp.float32)
    p["b1"] = 0.1 * jax.random.normal(ks[2], (c1,), jnp.float32)
    p["m1"] = 0.05 * jax.random.normal(ks[3], (c1,), jnp.float32)
    p["v1"] = 0.5 + jax.random.uniform(ks[4], (c1,), jnp.float32)
    p["w2"] = jax.random.normal(ks[5], (c2, c1, k, k), jnp.float32) * 0.1
    p["g2"] = 1.0 + 0.1 * jax.random.normal(ks[6], (c2,), jnp.float32)
    p["b2"] = 0.1 * jax.random.normal(ks[7], (c2,), jnp.float32)
    p["m2"] = 0.05 * jax.random.normal(ks[8], (c2,), jnp.float32)
    p["v2"] = 0.5 + jax.random.uniform(ks[9], (c2,), jnp.float32)
    return p


def image_encoder_forward(x_nchw, params):
    """forward_features + forward_head(pre_logits=True) of the synthetic backbone."""
    B = x_nchw.shape[0]
    c1 = params["w1"].shape[0]

    # NCHW -> NHWC; matmul operands in bf16 (f32 accumulation in-kernel).
    x = jnp.transpose(x_nchw, (0, 2, 3, 1)).astype(jnp.bfloat16)

    # Block 1: conv3x3 s1 p1 + BN + ReLU  (M-tiled Pallas MXU kernel)
    patches, Ho, Wo = im2col_nhwc(x, 3, 3, stride=1, pad=1)
    w1 = fold_conv_weight(params["w1"])
    s1, b1 = fold_bn(params["g1"], params["b1"], params["m1"], params["v1"])
    y = conv_bn_relu_tiled(patches, w1, s1, b1)       # (B*Ho*Wo, c1) bf16
    x = y.reshape(B, Ho, Wo, c1)

    # Block 2: conv3x3 s2 p1 + BN + ReLU, fused with global average pool
    # (forward_head(pre_logits=True), global_pool='avg', num_classes=0).
    patches2, Ho2, Wo2 = im2col_nhwc(x, 3, 3, stride=2, pad=1)
    S2 = Ho2 * Wo2
    patches2 = patches2.reshape(B, S2, patches2.shape[-1])
    w2 = fold_conv_weight(params["w2"])
    s2, b2 = fold_bn(params["g2"], params["b2"], params["m2"], params["v2"])
    return conv_bn_relu_avgpool(patches2, w2, s2, b2)  # (B, c2) f32


# ---------------------------------------------------------------------------
# Pure-JAX reference (f32) for a sanity check of the Pallas path
# ---------------------------------------------------------------------------

def reference_forward(x_nchw, params, eps=1e-5):
    def conv_bn_relu_ref(x, w, g, b, m, v, stride):
        y = jax.lax.conv_general_dilated(
            x, w, window_strides=(stride, stride), padding=((1, 1), (1, 1)),
            dimension_numbers=("NCHW", "OIHW", "NCHW"))
        scale = (g / jnp.sqrt(v + eps)).reshape(1, -1, 1, 1)
        bias = (b - m * g / jnp.sqrt(v + eps)).reshape(1, -1, 1, 1)
        return jnp.maximum(y * scale + bias, 0.0)

    x = conv_bn_relu_ref(x_nchw, params["w1"], params["g1"], params["b1"],
                         params["m1"], params["v1"], stride=1)
    x = conv_bn_relu_ref(x, params["w2"], params["g2"], params["b2"],
                         params["m2"], params["v2"], stride=2)
    return jnp.mean(x, axis=(2, 3))


if __name__ == "__main__":
    key = jax.random.PRNGKey(0)
    k_x, k_p = jax.random.split(key)

    B, Cin, H, W = 2, 3, 16, 16          # small CLIP-image-encoder-like input
    C1, C2 = 32, 64                       # trunk widths of the synthetic backbone

    x = jax.random.normal(k_x, (B, Cin, H, W), jnp.float32)
    params = make_params(k_p, Cin, C1, C2)

    fwd = jax.jit(functools.partial(image_encoder_forward, params=params))
    out = jax.block_until_ready(fwd(x))

    ref = reference_forward(x, params)
    assert out.shape == (B, C2), out.shape
    # bf16 matmul operands (f32 accumulate) vs f32 reference -> relaxed tol.
    assert jnp.allclose(out, ref, rtol=5e-2, atol=5e-2), \
        float(jnp.max(jnp.abs(out - ref)))

    print("KERNEL_OK")
</pallas_src>

<mosaic_0001>
module attributes {stable_mosaic.version = 11 : i64} {
  func.func @_conv_bn_relu_kernel(%arg0: i32, %arg1: memref<256x128xbf16, #tpu.memory_space<vmem>>, %arg2: memref<128x128xbf16, #tpu.memory_space<vmem>>, %arg3: memref<1x128xf32, #tpu.memory_space<vmem>>, %arg4: memref<1x128xf32, #tpu.memory_space<vmem>>, %arg5: memref<256x128xbf16, #tpu.memory_space<vmem>>) attributes {dimension_semantics = [#tpu.dimension_semantics<parallel>], iteration_bounds = array<i64: 2>, scalar_prefetch = 0 : i64, scratch_operands = 0 : i64, tpu.core_type = #tpu.core_type<tc>, window_params = [{transform_indices = @transform_0, window_bounds = array<i64: 256, 128>}, {pipeline_mode = #tpu.pipeline_mode<synchronous>, transform_indices = @transform_1, window_bounds = array<i64: 128, 128>}, {pipeline_mode = #tpu.pipeline_mode<synchronous>, transform_indices = @transform_2, window_bounds = array<i64: 1, 128>}, {pipeline_mode = #tpu.pipeline_mode<synchronous>, transform_indices = @transform_3, window_bounds = array<i64: 1, 128>}, {transform_indices = @transform_4, window_bounds = array<i64: 256, 128>}]} {
    %c0 = arith.constant 0 : index
    %c0_0 = arith.constant 0 : index
    %0 = vector.load %arg1[%c0, %c0_0] : memref<256x128xbf16, #tpu.memory_space<vmem>>, vector<256x128xbf16>
    %c0_1 = arith.constant 0 : index
    %c0_2 = arith.constant 0 : index
    %1 = vector.load %arg2[%c0_1, %c0_2] : memref<128x128xbf16, #tpu.memory_space<vmem>>, vector<128x128xbf16>
    %cst = arith.constant dense<0.000000e+00> : vector<256x128xf32>
    %2 = tpu.matmul %0, %1, %cst {dimension_numbers = #tpu.dot_dimension_numbers<[1], [0], [0], [1], [0, 0, 1, 1], [], []>} : vector<256x128xbf16>, vector<128x128xbf16>, vector<256x128xf32> -> vector<256x128xf32>
    %c0_3 = arith.constant 0 : index
    %c0_4 = arith.constant 0 : index
    %3 = vector.load %arg3[%c0_3, %c0_4] : memref<1x128xf32, #tpu.memory_space<vmem>>, vector<1x128xf32>
    %4 = vector.broadcast %3 : vector<1x128xf32> to vector<256x128xf32>
    %5 = arith.mulf %2, %4 : vector<256x128xf32>
    %c0_5 = arith.constant 0 : index
    %c0_6 = arith.constant 0 : index
    %6 = vector.load %arg4[%c0_5, %c0_6] : memref<1x128xf32, #tpu.memory_space<vmem>>, vector<1x128xf32>
    %7 = vector.broadcast %6 : vector<1x128xf32> to vector<256x128xf32>
    %8 = arith.addf %5, %7 : vector<256x128xf32>
    %cst_7 = arith.constant 0.000000e+00 : f32
    %9 = vector.broadcast %cst_7 : f32 to vector<256x128xf32>
    %10 = arith.maximumf %8, %9 : vector<256x128xf32>
    %11 = arith.truncf %10 : vector<256x128xf32> to vector<256x128xbf16>
    %c0_8 = arith.constant 0 : index
    %c0_9 = arith.constant 0 : index
    %12 = vector.load %arg5[%c0_8, %c0_9] : memref<256x128xbf16, #tpu.memory_space<vmem>>, vector<256x128xbf16>
    tpu.vector_store %arg5[%c0_8, %c0_9], %11 {strides = array<i32>} : memref<256x128xbf16, #tpu.memory_space<vmem>>, vector<256x128xbf16>,
    return
  }
  func.func @transform_0(%arg0: i32) -> (i32, i32) {
    %c0_i32 = arith.constant 0 : i32
    %c0_i32_0 = arith.constant 0 : i32
    return %arg0, %c0_i32 : i32, i32
  }
  func.func @transform_1(%arg0: i32) -> (i32, i32) {
    %c0_i32 = arith.constant 0 : i32
    %c0_i32_0 = arith.constant 0 : i32
    %c0_i32_1 = arith.constant 0 : i32
    return %c0_i32, %c0_i32_0 : i32, i32
  }
  func.func @transform_2(%arg0: i32) -> (i32, i32) {
    %c0_i32 = arith.constant 0 : i32
    %c0_i32_0 = arith.constant 0 : i32
    %c0_i32_1 = arith.constant 0 : i32
    return %c0_i32, %c0_i32_0 : i32, i32
  }
  func.func @transform_3(%arg0: i32) -> (i32, i32) {
    %c0_i32 = arith.constant 0 : i32
    %c0_i32_0 = arith.constant 0 : i32
    %c0_i32_1 = arith.constant 0 : i32
    return %c0_i32, %c0_i32_0 : i32, i32
  }
  func.func @transform_4(%arg0: i32) -> (i32, i32) {
    %c0_i32 = arith.constant 0 : i32
    %c0_i32_0 = arith.constant 0 : i32
    return %arg0, %c0_i32 : i32, i32
  }
}

module attributes {stable_mosaic.version = 11 : i64} {
  func.func @_conv_bn_relu_pool_kernel(%arg0: i32, %arg1: i32, %arg2: memref<1x64x384xbf16, #tpu.memory_space<vmem>>, %arg3: memref<384x128xbf16, #tpu.memory_space<vmem>>, %arg4: memref<1x128xf32, #tpu.memory_space<vmem>>, %arg5: memref<1x128xf32, #tpu.memory_space<vmem>>, %arg6: memref<1x1x128xf32, #tpu.memory_space<vmem>>, %arg7: memref<1x128xf32, #tpu.memory_space<vmem>>) attributes {dimension_semantics = [#tpu.dimension_semantics<parallel>, #tpu.dimension_semantics<arbitrary>], iteration_bounds = array<i64: 2, 1>, scalar_prefetch = 0 : i64, scratch_operands = 1 : i64, tpu.core_type = #tpu.core_type<tc>, window_params = [{transform_indices = @transform_0, window_bounds = array<i64: 1, 64, 384>}, {pipeline_mode = #tpu.pipeline_mode<synchronous>, transform_indices = @transform_1, window_bounds = array<i64: 384, 128>}, {pipeline_mode = #tpu.pipeline_mode<synchronous>, transform_indices = @transform_2, window_bounds = array<i64: 1, 128>}, {pipeline_mode = #tpu.pipeline_mode<synchronous>, transform_indices = @transform_3, window_bounds = array<i64: 1, 128>}, {transform_indices = @transform_4, window_bounds = array<i64: 1, 1, 128>}]} {
    %c0_i32 = arith.constant 0 : i32
    %0 = arith.cmpi eq, %arg1, %c0_i32 : i32
    %1 = arith.extui %0 : i1 to i32
    %c0_i32_0 = arith.constant 0 : i32
    %2 = arith.cmpi ne, %1, %c0_i32_0 : i32
    scf.if %2 {
      %cst_17 = arith.constant 0.000000e+00 : f32
      %23 = vector.broadcast %cst_17 : f32 to vector<1x128xf32>
      %c0_18 = arith.constant 0 : index
      %c0_19 = arith.constant 0 : index
      %24 = vector.load %arg7[%c0_18, %c0_19] : memref<1x128xf32, #tpu.memory_space<vmem>>, vector<1x128xf32>
      tpu.vector_store %arg7[%c0_18, %c0_19], %23 {strides = array<i32>} : memref<1x128xf32, #tpu.memory_space<vmem>>, vector<1x128xf32>,
    } else {
    }
    %c0 = arith.constant 0 : index
    %c0_1 = arith.constant 0 : index
    %c0_2 = arith.constant 0 : index
    %3 = vector.load %arg2[%c0, %c0_1, %c0_2] : memref<1x64x384xbf16, #tpu.memory_space<vmem>>, vector<1x64x384xbf16>
    %4 = vector.shape_cast %3 : vector<1x64x384xbf16> to vector<64x384xbf16>
    %c0_3 = arith.constant 0 : index
    %c0_4 = arith.constant 0 : index
    %5 = vector.load %arg3[%c0_3, %c0_4] : memref<384x128xbf16, #tpu.memory_space<vmem>>, vector<384x128xbf16>
    %cst = arith.constant dense<0.000000e+00> : vector<64x128xf32>
    %6 = tpu.matmul %4, %5, %cst {dimension_numbers = #tpu.dot_dimension_numbers<[1], [0], [0], [1], [0, 0, 1, 1], [], []>} : vector<64x384xbf16>, vector<384x128xbf16>, vector<64x128xf32> -> vector<64x128xf32>
    %c0_5 = arith.constant 0 : index
    %c0_6 = arith.constant 0 : index
    %7 = vector.load %arg4[%c0_5, %c0_6] : memref<1x128xf32, #tpu.memory_space<vmem>>, vector<1x128xf32>
    %8 = vector.broadcast %7 : vector<1x128xf32> to vector<64x128xf32>
    %9 = arith.mulf %6, %8 : vector<64x128xf32>
    %c0_7 = arith.constant 0 : index
    %c0_8 = arith.constant 0 : index
    %10 = vector.load %arg5[%c0_7, %c0_8] : memref<1x128xf32, #tpu.memory_space<vmem>>, vector<1x128xf32>
    %11 = vector.broadcast %10 : vector<1x128xf32> to vector<64x128xf32>
    %12 = arith.addf %9, %11 : vector<64x128xf32>
    %cst_9 = arith.constant 0.000000e+00 : f32
    %13 = vector.broadcast %cst_9 : f32 to vector<64x128xf32>
    %14 = arith.maximumf %12, %13 : vector<64x128xf32>
    %c0_10 = arith.constant 0 : index
    %c0_11 = arith.constant 0 : index
    %15 = vector.load %arg7[%c0_10, %c0_11] : memref<1x128xf32, #tpu.memory_space<vmem>>, vector<1x128xf32>
    %cst_12 = arith.constant dense<0.000000e+00> : vector<128xf32>
    %16 = vector.multi_reduction <add>, %14, %cst_12 [0] : vector<64x128xf32> to vector<128xf32>
    %17 = vector.shape_cast %16 : vector<128xf32> to vector<1x128xf32>
    %18 = arith.addf %15, %17 : vector<1x128xf32>
    %c0_13 = arith.constant 0 : index
    %c0_14 = arith.constant 0 : index
    %19 = vector.load %arg7[%c0_13, %c0_14] : memref<1x128xf32, #tpu.memory_space<vmem>>, vector<1x128xf32>
    tpu.vector_store %arg7[%c0_13, %c0_14], %18 {strides = array<i32>} : memref<1x128xf32, #tpu.memory_space<vmem>>, vector<1x128xf32>,
    %c0_i32_15 = arith.constant 0 : i32
    %20 = arith.cmpi eq, %arg1, %c0_i32_15 : i32
    %21 = arith.extui %20 : i1 to i32
    %c0_i32_16 = arith.constant 0 : i32
    %22 = arith.cmpi ne, %21, %c0_i32_16 : i32
    scf.if %22 {
      %c0_17 = arith.constant 0 : index
      %c0_18 = arith.constant 0 : index
      %23 = vector.load %arg7[%c0_17, %c0_18] : memref<1x128xf32, #tpu.memory_space<vmem>>, vector<1x128xf32>
      %cst_19 = arith.constant 1.562500e-02 : f32
      %24 = vector.broadcast %cst_19 : f32 to vector<1x128xf32>
      %25 = arith.mulf %23, %24 : vector<1x128xf32>
      %26 = vector.shape_cast %25 : vector<1x128xf32> to vector<1x1x128xf32>
      %c0_20 = arith.constant 0 : index
      %c0_21 = arith.constant 0 : index
      %c0_22 = arith.constant 0 : index
      %27 = vector.load %arg6[%c0_20, %c0_21, %c0_22] : memref<1x1x128xf32, #tpu.memory_space<vmem>>, vector<1x1x128xf32>
      tpu.vector_store %arg6[%c0_20, %c0_21, %c0_22], %26 {strides = array<i32>} : memref<1x1x128xf32, #tpu.memory_space<vmem>>, vector<1x1x128xf32>,
    } else {
    }
    return
  }
  func.func @transform_0(%arg0: i32, %arg1: i32) -> (i32, i32, i32) {
    %c0_i32 = arith.constant 0 : i32
    %c0_i32_0 = arith.constant 0 : i32
    return %arg0, %arg1, %c0_i32 : i32, i32, i32
  }
  func.func @transform_1(%arg0: i32, %arg1: i32) -> (i32, i32) {
    %c0_i32 = arith.constant 0 : i32
    %c0_i32_0 = arith.constant 0 : i32
    %c0_i32_1 = arith.constant 0 : i32
    return %c0_i32, %c0_i32_0 : i32, i32
  }
  func.func @transform_2(%arg0: i32, %arg1: i32) -> (i32, i32) {
    %c0_i32 = arith.constant 0 : i32
    %c0_i32_0 = arith.constant 0 : i32
    %c0_i32_1 = arith.constant 0 : i32
    return %c0_i32, %c0_i32_0 : i32, i32
  }
  func.func @transform_3(%arg0: i32, %arg1: i32) -> (i32, i32) {
    %c0_i32 = arith.constant 0 : i32
    %c0_i32_0 = arith.constant 0 : i32
    %c0_i32_1 = arith.constant 0 : i32
    return %c0_i32, %c0_i32_0 : i32, i32
  }
  func.func @transform_4(%arg0: i32, %arg1: i32) -> (i32, i32, i32) {
    %c0_i32 = arith.constant 0 : i32
    %c0_i32_0 = arith.constant 0 : i32
    %c0_i32_1 = arith.constant 0 : i32
    return %arg0, %c0_i32, %c0_i32_0 : i32, i32, i32
  }
}

</mosaic_0001>

<bundles_post_ra>
// kernel: image_encoder_forward.2
= control target key start
LH: loop header
LB: loop body
LE: loop exit
PB: predicated region body
PF: predicated region fallthrough
CT: control target
= control target key end

     0   :  { %s1230_s15 = smov 0   ;;  %s1388_s0 = inlined_call_operand.vmem [shape: bf16[512,128], index: 0, kind: input, shape index: {}]   ;;  %s1389_s1 = inlined_call_operand.vmem [shape: bf16[128,128], index: 1, kind: input, shape index: {}]   ;;  %s1390_s2 = inlined_call_operand.vmem [shape: f32[1,128], index: 2, kind: input, shape index: {}]   ;;  %s1391_s3 = inlined_call_operand.vmem [shape: f32[1,128], index: 3, kind: input, shape index: {}]   ;;  %s1392_s4 = inlined_call_operand.vmem [shape: bf16[512,128], index: 4, kind: output, shape index: {}]  }
   0x1 LB: > { %s881_s16 = sadd.s32 4294967295, %s1203_s15   ;;  %p885_p0 = scmp.ge.s32.totalorder %s1203_s15, 1  ;;  %s1203_s15 = sphi %s1230_s15, %s14_s15  }
   0x2   : > { %p163_p1 = scmp.lt.s32.totalorder %s1203_s15, 3 }
   0x4   : > { %p164_p2 = pnand %p885_p0, %p163_p1 }
   0x5   : > { %v1173_v0 = vld [vmem:[%s1389_s1] sm:$0xff] (!%p164_p2)   ;;  %s886_s19 = sshll.u32 (!%p164_p2), %s881_s16, 5  ;;  %v1174_v1 = vld [vmem:[%s1389_s1 + $0x8] sm:$0xff] (!%p164_p2)   ;;  %v1175_v2 = vld [vmem:[%s1389_s1 + $0x10] sm:$0xff] (!%p164_p2)  }
   0x6   : > { %167 = sbr.rel (%p164_p2) target bundleno = 287 (0x11f), region = 36  ;;  %p190_p3 = scmp.lt.s32.totalorder (!%p164_p2), %s886_s19, 63  ;;  %1101 = vmatprep.subr.bf16.mxu0 (!%p164_p2), %v1173_v0  ;;  %1149 = vmatprep.subr.bf16.mxu1 (!%p164_p2), %v1173_v0  ;;  %v1176_v3 = vld [vmem:[%s1389_s1 + $0x18] sm:$0xff] (!%p164_p2)   ;;  %v1177_v6 = vld [vmem:[%s1389_s1 + $0x20] sm:$0xff] (!%p164_p2)   ;;  %v1178_v7 = vld [vmem:[%s1389_s1 + $0x28] sm:$0xff] (!%p164_p2)  }
   0x7   : > { %1102 = vmatpush3.bf16.msra.mxu0 (!%p164_p2), %v1173_v0  ;;  %1157 = vmatpush3.bf16.msra.mxu1 (!%p164_p2), %v1173_v0  ;;  %v1179_v8 = vld [vmem:[%s1389_s1 + $0x30] sm:$0xff] (!%p164_p2)   ;;  %v1180_v9 = vld [vmem:[%s1389_s1 + $0x38] sm:$0xff] (!%p164_p2)   ;;  %v1291_v24 = vld [vmem:[%s1390_s2] ss:$0 sm:$0xff] (!%p164_p2) }
   0x8   : > { %1103 = vmatprep.subr.bf16.mxu0 (!%p164_p2), %v1174_v1  ;;  %1150 = vmatprep.subr.bf16.mxu1 (!%p164_p2), %v1174_v1  ;;  %v1296_v26 = vld [vmem:[%s1391_s3] ss:$0 sm:$0xff] (!%p164_p2) }
   0xb   : > { %1104 = vmatpush3.bf16.msra.mxu0 (!%p164_p2), %v1174_v1  ;;  %1158 = vmatpush3.bf16.msra.mxu1 (!%p164_p2), %v1174_v1 }
   0xc   : > { %1105 = vmatprep.subr.bf16.mxu0 (!%p164_p2), %v1175_v2  ;;  %1151 = vmatprep.subr.bf16.mxu1 (!%p164_p2), %v1175_v2 }
   0xd   : > { %s1394_s19 = smov (!%p190_p3, %s886_s19), 63 }
   0xe   : > { %s887_s24 = sshll.u32 %s1394_s19, 2 }
   0xf   : > { %s1255_s27 = scalar_lea.vmem %s1388_s0, %s887_s24  ;;  %1106 = vmatpush3.bf16.msra.mxu0 %v1175_v2  ;;  %1159 = vmatpush3.bf16.msra.mxu1 %v1175_v2  ;;  %s1319_s20 = scalar_lea.vmem %s1392_s4, %s887_s24 }
  0x10   : > { %v1181_v4 = vld [vmem:[%s1255_s27] sm:$0xff]   ;;  %1107 = vmatprep.subr.bf16.mxu0 %v1176_v3  ;;  %1152 = vmatprep.subr.bf16.mxu1 %v1176_v3  ;;  %v1183_v10 = vld [vmem:[%s1255_s27 + $0x8] sm:$0xff]   ;;  %v1185_v12 = vld [vmem:[%s1255_s27 + $0x10] sm:$0xff]  }
  0x11   : > { %v1182_v5 = vld [vmem:[%s1255_s27 + $0x40] sm:$0xff]   ;;  %1117 = vmatprep.mubr.bf16.mxu0 %v1181_v4  ;;  %v1184_v11 = vld [vmem:[%s1255_s27 + $0x48] sm:$0xff]   ;;  %v1186_v13 = vld [vmem:[%s1255_s27 + $0x50] sm:$0xff]  }
  0x12   : > { %1133 = vmatprep.mubr.bf16.mxu1 %v1182_v5  ;;  %v1187_v14 = vld [vmem:[%s1255_s27 + $0x18] sm:$0xff]   ;;  %v1189_v16 = vld [vmem:[%s1255_s27 + $0x20] sm:$0xff]   ;;  %v1191_v18 = vld [vmem:[%s1255_s27 + $0x28] sm:$0xff]  }
  0x13   : > { %1108 = vmatpush3.bf16.msra.mxu0 %v1176_v3  ;;  %1160 = vmatpush3.bf16.msra.mxu1 %v1176_v3  ;;  %v1188_v15 = vld [vmem:[%s1255_s27 + $0x58] sm:$0xff]   ;;  %v1190_v17 = vld [vmem:[%s1255_s27 + $0x60] sm:$0xff]   ;;  %v1192_v19 = vld [vmem:[%s1255_s27 + $0x68] sm:$0xff]  }
  0x14   : > { %1109 = vmatprep.subr.bf16.mxu0 %v1177_v6  ;;  %1153 = vmatprep.subr.bf16.mxu1 %v1177_v6  ;;  %v1193_v20 = vld [vmem:[%s1255_s27 + $0x30] sm:$0xff]   ;;  %v1195_v22 = vld [vmem:[%s1255_s27 + $0x38] sm:$0xff]  }
  0x15   : > { %v1194_v21 = vld [vmem:[%s1255_s27 + $0x70] sm:$0xff]   ;;  %v1196_v23 = vld [vmem:[%s1255_s27 + $0x78] sm:$0xff]  }
  0x17   : > { %1110 = vmatpush3.bf16.msra.mxu0 %v1177_v6  ;;  %1161 = vmatpush3.bf16.msra.mxu1 %v1177_v6 }
  0x18   : > { %1111 = vmatprep.subr.bf16.mxu0 %v1178_v7  ;;  %1154 = vmatprep.subr.bf16.mxu1 %v1178_v7 }
  0x1b   : > { %1112 = vmatpush3.bf16.msra.mxu0 %v1178_v7  ;;  %1162 = vmatpush3.bf16.msra.mxu1 %v1178_v7 }
  0x1c   : > { %1113 = vmatprep.subr.bf16.mxu0 %v1179_v8  ;;  %1155 = vmatprep.subr.bf16.mxu1 %v1179_v8 }
  0x1f   : > { %1114 = vmatpush3.bf16.msra.mxu0 %v1179_v8  ;;  %1163 = vmatpush3.bf16.msra.mxu1 %v1179_v8 }
  0x20   : > { %1115 = vmatprep.subr.bf16.mxu0 %v1180_v9  ;;  %1156 = vmatprep.subr.bf16.mxu1 %v1180_v9 }
  0x23   : > { %1116 = vmatpush3.bf16.msra.mxu0 %v1180_v9  ;;  %1164 = vmatpush3.bf16.msra.mxu1 %v1180_v9 }
  0x26   : > { %1118 = vmatmul.mubr.bf16.vlgmr.msra.gmra.mrb[0].mxu0 %v1183_v10  ;;  %1134 = vmatmul.mubr.bf16.vlgmr.msra.gmra.mrb[0].mxu1 %v1184_v11 }
  0x27   : > { %1121 = vmatprep.mubr.bf16.mxu0 %v1185_v12  ;;  %1137 = vmatprep.mubr.bf16.mxu1 %v1186_v13 }
  0x2e   : > { %1122 = vmatmul.mubr.bf16.gmra.mrb[4].mxu0 %v1187_v14  ;;  %1138 = vmatmul.mubr.bf16.gmra.mrb[4].mxu1 %v1188_v15 }
  0x2f   : > { %1125 = vmatprep.mubr.bf16.mxu0 %v1189_v16  ;;  %1141 = vmatprep.mubr.bf16.mxu1 %v1190_v17 }
  0x36   : > { %1126 = vmatmul.mubr.bf16.gmra.mrb[8].mxu0 %v1191_v18  ;;  %1142 = vmatmul.mubr.bf16.gmra.mrb[8].mxu1 %v1192_v19 }
  0x37   : > { %1129 = vmatprep.mubr.bf16.mxu0 %v1193_v20  ;;  %1145 = vmatprep.mubr.bf16.mxu1 %v1194_v21 }
  0x3e   : > { %1130 = vmatmul.mubr.bf16.gmra.mrb[12].mxu0 %v1195_v22  ;;  %1146 = vmatmul.mubr.bf16.gmra.mrb[12].mxu1 %v1196_v23 }
  0xf9   : > { %v1119_v25 = vpop.f32.mrb[0].mxu0  ;;  %v1135_v27 = vpop.f32.mrb[0].mxu1 }
  0xfa   : > { %v564_v28 = vmul.f32 %v1119_v25, %v1291_v24  ;;  %v580_v29 = vmul.f32 %v1135_v27, %v1291_v24  ;;  %v428_v30 = vpop.f32.mrb[1].mxu0  ;;  %v492_v31 = vpop.f32.mrb[1].mxu1 }
  0xfb   : > { %v562_v32 = vmul.f32 %v1291_v24, %v428_v30  ;;  %v578_v33 = vmul.f32 %v1291_v24, %v492_v31  ;;  %v1120_v34 = vpop.f32.mrb[2].mxu0  ;;  %v1136_v35 = vpop.f32.mrb[2].mxu1 }
  0xfc   : > { %v603_v36 = vadd.f32 %v1296_v26, %v564_v28  ;;  %v619_v37 = vadd.f32 %v1296_v26, %v580_v29  ;;  %v565_v38 = vmul.f32 %v1120_v34, %v1291_v24  ;;  %v581_v39 = vmul.f32 %v1136_v35, %v1291_v24  ;;  %v431_v40 = vpop.f32.mrb[3].mxu0  ;;  %v495_v41 = vpop.f32.mrb[3].mxu1 }
  0xfd   : > { %v601_v42 = vadd.f32 %v1296_v26, %v562_v32  ;;  %v617_v43 = vadd.f32 %v1296_v26, %v578_v33  ;;  %v563_v44 = vmul.f32 %v1291_v24, %v431_v40  ;;  %v579_v45 = vmul.f32 %v1291_v24, %v495_v41 }
  0xfe   : > { %v604_v46 = vadd.f32 %v1296_v26, %v565_v38  ;;  %v620_v47 = vadd.f32 %v1296_v26, %v581_v39  ;;  %v635_v50 = vmax.f32 %v603_v36, 0.0  ;;  %v651_v51 = vmax.f32 %v619_v37, 0.0 }
  0xff   : > { %v602_v48 = vadd.f32 %v1296_v26, %v563_v44  ;;  %v618_v49 = vadd.f32 %v1296_v26, %v579_v45  ;;  %v633_v54 = vmax.f32 %v601_v42, 0.0  ;;  %v649_v55 = vmax.f32 %v617_v43, 0.0 }
 0x100   : > { %v636_v52 = vmax.f32 %v604_v46, 0.0  ;;  %v652_v53 = vmax.f32 %v620_v47, 0.0 }
 0x101   : > { %v634_v56 = vmax.f32 %v602_v48, 0.0  ;;  %v650_v57 = vmax.f32 %v618_v49, 0.0  ;;  %v1123_v58 = vpop.f32.mrb[4].mxu0  ;;  %v1139_v59 = vpop.f32.mrb[4].mxu1 }
 0x102   : > { %v990_v60 = vpack.c.bf16 %v636_v52, %v635_v50  ;;  %v1030_v61 = vpack.c.bf16 %v652_v53, %v651_v51  ;;  %v568_v62 = vmul.f32 %v1123_v58, %v1291_v24  ;;  %v584_v63 = vmul.f32 %v1139_v59, %v1291_v24  ;;  %v444_v0 = vpop.f32.mrb[5].mxu0  ;;  %v508_v1 = vpop.f32.mrb[5].mxu1 }
 0x103   : > { %v985_v2 = vpack.c.bf16 %v634_v56, %v633_v54  ;;  %v1025_v3 = vpack.c.bf16 %v650_v57, %v649_v55  ;;  %v566_v4 = vmul.f32 %v1291_v24, %v444_v0  ;;  %v582_v5 = vmul.f32 %v1291_v24, %v508_v1  ;;  %v1124_v6 = vpop.f32.mrb[6].mxu0  ;;  %v1140_v7 = vpop.f32.mrb[6].mxu1 }
 0x104   : > { %1062 = vst [vmem:[%s1319_s20 + $0x8] sm:$0xff] %v990_v60   ;;  %1070 = vst [vmem:[%s1319_s20 + $0x48] sm:$0xff] %v1030_v61   ;;  %v607_v8 = vadd.f32 %v1296_v26, %v568_v62  ;;  %v623_v9 = vadd.f32 %v1296_v26, %v584_v63  ;;  %v569_v10 = vmul.f32 %v1124_v6, %v1291_v24  ;;  %v447_v12 = vpop.f32.mrb[7].mxu0  ;;  %v511_v13 = vpop.f32.mrb[7].mxu1 }
 0x105   : > { %v585_v11 = vmul.f32 %v1140_v7, %v1291_v24  ;;  %986 = vst [vmem:[%s1319_s20] sm:$0xff] %v985_v2   ;;  %1069 = vst [vmem:[%s1319_s20 + $0x40] sm:$0xff] %v1025_v3   ;;  %v605_v14 = vadd.f32 %v1296_v26, %v566_v4  ;;  %v621_v15 = vadd.f32 %v1296_v26, %v582_v5 }
 0x106   : > { %v567_v16 = vmul.f32 %v1291_v24, %v447_v12  ;;  %v583_v17 = vmul.f32 %v1291_v24, %v511_v13  ;;  %v608_v18 = vadd.f32 %v1296_v26, %v569_v10  ;;  %v639_v22 = vmax.f32 %v607_v8, 0.0 }
 0x107   : > { %v624_v19 = vadd.f32 %v1296_v26, %v585_v11  ;;  %v655_v23 = vmax.f32 %v623_v9, 0.0  ;;  %v637_v28 = vmax.f32 %v605_v14, 0.0  ;;  %v653_v29 = vmax.f32 %v621_v15, 0.0 }
 0x108   : > { %v606_v20 = vadd.f32 %v1296_v26, %v567_v16  ;;  %v622_v21 = vadd.f32 %v1296_v26, %v583_v17  ;;  %v640_v25 = vmax.f32 %v608_v18, 0.0 }
 0x109   : > { %v656_v27 = vmax.f32 %v624_v19, 0.0  ;;  %v1127_v32 = vpop.f32.mrb[8].mxu0  ;;  %v1143_v33 = vpop.f32.mrb[8].mxu1 }
 0x10a   : > { %v638_v30 = vmax.f32 %v606_v20, 0.0  ;;  %v654_v31 = vmax.f32 %v622_v21, 0.0  ;;  %v1000_v34 = vpack.c.bf16 %v640_v25, %v639_v22  ;;  %v572_v36 = vmul.f32 %v1127_v32, %v1291_v24  ;;  %v460_v38 = vpop.f32.mrb[9].mxu0  ;;  %v524_v39 = vpop.f32.mrb[9].mxu1 }
 0x10b   : > { %v1040_v35 = vpack.c.bf16 %v656_v27, %v655_v23  ;;  %v588_v37 = vmul.f32 %v1143_v33, %v1291_v24  ;;  %v570_v42 = vmul.f32 %v1291_v24, %v460_v38  ;;  %v586_v43 = vmul.f32 %v1291_v24, %v524_v39  ;;  %v1128_v44 = vpop.f32.mrb[10].mxu0  ;;  %v1144_v45 = vpop.f32.mrb[10].mxu1 }
 0x10c   : > { %v995_v40 = vpack.c.bf16 %v638_v30, %v637_v28  ;;  %v1035_v41 = vpack.c.bf16 %v654_v31, %v653_v29  ;;  %1064 = vst [vmem:[%s1319_s20 + $0x18] sm:$0xff] %v1000_v34   ;;  %v611_v46 = vadd.f32 %v1296_v26, %v572_v36  ;;  %v573_v48 = vmul.f32 %v1128_v44, %v1291_v24  ;;  %v463_v50 = vpop.f32.mrb[11].mxu0  ;;  %v527_v51 = vpop.f32.mrb[11].mxu1 }
 0x10d   : > { %1072 = vst [vmem:[%s1319_s20 + $0x58] sm:$0xff] %v1040_v35   ;;  %v627_v47 = vadd.f32 %v1296_v26, %v588_v37  ;;  %v589_v49 = vmul.f32 %v1144_v45, %v1291_v24  ;;  %v609_v52 = vadd.f32 %v1296_v26, %v570_v42  ;;  %v625_v53 = vadd.f32 %v1296_v26, %v586_v43 }
 0x10e   : > { %1063 = vst [vmem:[%s1319_s20 + $0x10] sm:$0xff] %v995_v40   ;;  %1071 = vst [vmem:[%s1319_s20 + $0x50] sm:$0xff] %v1035_v41   ;;  %v571_v54 = vmul.f32 %v1291_v24, %v463_v50  ;;  %v587_v55 = vmul.f32 %v1291_v24, %v527_v51  ;;  %v612_v56 = vadd.f32 %v1296_v26, %v573_v48  ;;  %v643_v60 = vmax.f32 %v611_v46, 0.0 }
 0x10f   : > { %v628_v57 = vadd.f32 %v1296_v26, %v589_v49  ;;  %v659_v61 = vmax.f32 %v627_v47, 0.0  ;;  %v641_v0 = vmax.f32 %v609_v52, 0.0  ;;  %v657_v1 = vmax.f32 %v625_v53, 0.0 }
 0x110   : > { %v610_v58 = vadd.f32 %v1296_v26, %v571_v54  ;;  %v626_v59 = vadd.f32 %v1296_v26, %v587_v55  ;;  %v644_v62 = vmax.f32 %v612_v56, 0.0 }
 0x111   : > { %v660_v63 = vmax.f32 %v628_v57, 0.0  ;;  %v1131_v4 = vpop.f32.mrb[12].mxu0  ;;  %v1147_v5 = vpop.f32.mrb[12].mxu1 }
 0x112   : > { %v642_v2 = vmax.f32 %v610_v58, 0.0  ;;  %v658_v3 = vmax.f32 %v626_v59, 0.0  ;;  %v1010_v6 = vpack.c.bf16 %v644_v62, %v643_v60  ;;  %v576_v8 = vmul.f32 %v1131_v4, %v1291_v24  ;;  %v476_v10 = vpop.f32.mrb[13].mxu0  ;;  %v540_v11 = vpop.f32.mrb[13].mxu1 }
 0x113   : > { %v1050_v7 = vpack.c.bf16 %v660_v63, %v659_v61  ;;  %v592_v9 = vmul.f32 %v1147_v5, %v1291_v24  ;;  %v574_v14 = vmul.f32 %v1291_v24, %v476_v10  ;;  %v590_v15 = vmul.f32 %v1291_v24, %v540_v11  ;;  %v1132_v16 = vpop.f32.mrb[14].mxu0  ;;  %v1148_v17 = vpop.f32.mrb[14].mxu1 }
 0x114   : > { %v1005_v12 = vpack.c.bf16 %v642_v2, %v641_v0  ;;  %v1045_v13 = vpack.c.bf16 %v658_v3, %v657_v1  ;;  %1066 = vst [vmem:[%s1319_s20 + $0x28] sm:$0xff] %v1010_v6   ;;  %v615_v18 = vadd.f32 %v1296_v26, %v576_v8  ;;  %v577_v20 = vmul.f32 %v1132_v16, %v1291_v24  ;;  %v479_v22 = vpop.f32.mrb[15].mxu0  ;;  %v543_v23 = vpop.f32.mrb[15].mxu1 }
 0x115   : > { %1074 = vst [vmem:[%s1319_s20 + $0x68] sm:$0xff] %v1050_v7   ;;  %v631_v19 = vadd.f32 %v1296_v26, %v592_v9  ;;  %v593_v21 = vmul.f32 %v1148_v17, %v1291_v24  ;;  %v613_v25 = vadd.f32 %v1296_v26, %v574_v14  ;;  %v629_v27 = vadd.f32 %v1296_v26, %v590_v15 }
 0x116   : > { %1065 = vst [vmem:[%s1319_s20 + $0x20] sm:$0xff] %v1005_v12   ;;  %1073 = vst [vmem:[%s1319_s20 + $0x60] sm:$0xff] %v1045_v13   ;;  %v575_v28 = vmul.f32 %v1291_v24, %v479_v22  ;;  %v591_v29 = vmul.f32 %v1291_v24, %v543_v23  ;;  %v616_v30 = vadd.f32 %v1296_v26, %v577_v20  ;;  %v647_v34 = vmax.f32 %v615_v18, 0.0 }
 0x117   : > { %v632_v31 = vadd.f32 %v1296_v26, %v593_v21  ;;  %v663_v35 = vmax.f32 %v631_v19, 0.0  ;;  %v645_v38 = vmax.f32 %v613_v25, 0.0  ;;  %v661_v39 = vmax.f32 %v629_v27, 0.0 }
 0x118   : > { %v614_v32 = vadd.f32 %v1296_v26, %v575_v28  ;;  %v630_v33 = vadd.f32 %v1296_v26, %v591_v29  ;;  %v648_v36 = vmax.f32 %v616_v30, 0.0 }
 0x119   : > { %v664_v37 = vmax.f32 %v632_v31, 0.0 }
 0x11a   : > { %v646_v40 = vmax.f32 %v614_v32, 0.0  ;;  %v662_v24 = vmax.f32 %v630_v33, 0.0  ;;  %v1020_v41 = vpack.c.bf16 %v648_v36, %v647_v34 }
 0x11b   : > { %v1060_v42 = vpack.c.bf16 %v664_v37, %v663_v35 }
 0x11c   : > { %v1015_v43 = vpack.c.bf16 %v646_v40, %v645_v38  ;;  %v1055_v44 = vpack.c.bf16 %v662_v24, %v661_v39  ;;  %1068 = vst [vmem:[%s1319_s20 + $0x38] sm:$0xff] %v1020_v41  }
 0x11d   : > { %1076 = vst [vmem:[%s1319_s20 + $0x78] sm:$0xff] %v1060_v42  }
 0x11e   : > { %1067 = vst [vmem:[%s1319_s20 + $0x30] sm:$0xff] %v1015_v43   ;;  %1075 = vst [vmem:[%s1319_s20 + $0x70] sm:$0xff] %v1055_v44  }
 0x11f PF: > { %s14_s15 = sadd.s32 1, %s1203_s15  }
 0x120   : > { %p11_p4 = scmp.ge.s32.totalorder %s14_s15, 4  }
 0x122   :  { %13 = sbr.rel (!%p11_p4) target bundleno = 1 (0x1), region = 66 }

// kernel: image_encoder_forward.3
= control target key start
LH: loop header
LB: loop body
LE: loop exit
PB: predicated region body
PF: predicated region fallthrough
CT: control target
= control target key end

     0   :  { %9 = vsyncpa [#allocation4], 0  ;;  %s1310_s0 = inlined_call_operand.vmem [shape: bf16[2,64,384], index: 0, kind: input, shape index: {}]   ;;  %s1311_s1 = inlined_call_operand.vmem [shape: bf16[384,128], index: 1, kind: input, shape index: {}]   ;;  %s1312_s2 = inlined_call_operand.vmem [shape: f32[1,128], index: 2, kind: input, shape index: {}]   ;;  %s1313_s3 = inlined_call_operand.vmem [shape: f32[1,128], index: 3, kind: input, shape index: {}]   ;;  %s1314_s4 = inlined_call_operand.hbm [shape: f32[2,1,128], index: 4, kind: output, shape index: {}]  }
   0x1   :  { %11 = vsyncpa [#allocation4 + $0x1], 0  ;;  %s1106_s15 = smov 0   ;;  %s1108_s16 = smov 0  }
   0x2   :  { %s1110_s17 = smov 0   ;;  %s1112_s18 = smov 0  }
   0x3   :  { %s1114_s19 = smov 0   ;;  %s1116_s20 = smov 0  }
   0x4 LB: > { %s779_s21 = sadd.s32 4294967295, %s1077_s20   ;;  %s780_s22 = sadd.s32 4294967294, %s1077_s20   ;;  %s1077_s20 = sphi %s1116_s20, %s17_s20   ;;  %s1073_s19 = sphi %s1114_s19, %s1321_s19   ;;  %s1069_s18 = sphi %s1112_s18, %s1320_s18   ;;  %s1065_s17 = sphi %s1110_s17, %s1319_s17   ;;  %s1061_s16 = sphi %s1108_s16, %s1318_s16   ;;  %s1057_s15 = sphi %s1106_s15, %s1317_s15  }
   0x5   : > { %s29_s23 = sadd.s32 1, %s1073_s19  ;;  %s127_s24 = sadd.s32 1, %s1065_s17 }
   0x6   : > { %p31_p0 = scmp.ge.s32.totalorder %s29_s23, 2  ;;  %p137_p1 = scmp.ne.s32.totalorder %s1065_s17, %s1061_s16 }
   0x7   : > { %p138_p2 = scmp.eq.s32.totalorder %s779_s21, 1  ;;  %p143_p3 = scmp.ne.s32.totalorder %s1061_s16, %s1057_s15 }
   0x8   : > { %s1323_s23 = smov (%p31_p0, %s29_s23), 0  ;;  %p144_p5 = scmp.eq.s32.totalorder %s780_s22, 1 }
   0x9   : > { %p1146_p4 = por %p138_p2, %p137_p1  ;;  %s124_s26 = ssub.s32 %s1073_s19, %s1323_s23 }
   0xa   : > { %p783_p6 = scmp.ge.s32.totalorder %s1077_s20, 1  ;;  %p125_p7 = scmp.eq.s32.totalorder %s124_s26, 0 }
   0xb   : > { %p1153_p8 = por %p144_p5, %p143_p3  ;;  %p185_p9 = scmp.lt.s32.totalorder %s1077_s20, 3 }
   0xc   : > { %s1159_s28 = scalar_select %p125_p7, %s1065_s17, %s127_s24  }
   0xd   : > { %p186_p10 = pnand %p783_p6, %p185_p9 }
   0xe   : > { %v959_v0 = vld [vmem:[%s1311_s1 + $0x40] sm:$0xff] (!%p186_p10)   ;;  %v962_v3 = vld [vmem:[%s1311_s1 + $0x48] sm:$0xff] (!%p186_p10)   ;;  %v965_v6 = vld [vmem:[%s1311_s1 + $0x50] sm:$0xff] (!%p186_p10)   ;;  %p216_p11 = scmp.lt.s32.totalorder (!%p186_p10), %s1069_s18, 1  ;;  %v1079_v36 = vmov (!%p186_p10), 0.0   ;;  %s213_s12 = sand.u32 (!%p186_p10), 1, %s1061_s16  }
   0xf   : > { %189 = sbr.rel (%p186_p10) target bundleno = 336 (0x150), region = 36  ;;  %v960_v1 = vld [vmem:[%s1311_s1] sm:$0xff] (!%p186_p10)   ;;  %826 = vmatprep.subr.bf16.mxu0 (!%p186_p10), %v959_v0  ;;  %v963_v4 = vld [vmem:[%s1311_s1 + $0x8] sm:$0xff] (!%p186_p10)   ;;  %v966_v7 = vld [vmem:[%s1311_s1 + $0x10] sm:$0xff] (!%p186_p10)   ;;  %231 = vst [vmem:[#allocation2] sm:$0x1] (!%p186_p10), %v1079_v36 }
  0x10   : > { %v961_v2 = vld [vmem:[%s1311_s1 + $0x80] sm:$0xff] (!%p186_p10)   ;;  %827 = vmatpush3.bf16.msra.mxu0 (!%p186_p10), %v960_v1  ;;  %v964_v5 = vld [vmem:[%s1311_s1 + $0x88] sm:$0xff] (!%p186_p10)   ;;  %v967_v8 = vld [vmem:[%s1311_s1 + $0x90] sm:$0xff] (!%p186_p10)   ;;  %s823_s13 = sshll.u32 (!%p186_p10), %s1069_s18, 4  ;;  %s214_s14 = scalar_lea.vmem (!%p186_p10), [#allocation3], %s213_s12 }
  0x11   : > { %878 = vmatprep.subr.bf16.mxu1 (!%p186_p10), %v961_v2  ;;  %828 = vmatprep.subr.bf16.mxu0 (!%p186_p10), %v962_v3  ;;  %v968_v9 = vld [vmem:[%s1311_s1 + $0x58] sm:$0xff] (!%p186_p10)   ;;  %v971_v12 = vld [vmem:[%s1311_s1 + $0x60] sm:$0xff] (!%p186_p10)   ;;  %v974_v15 = vld [vmem:[%s1311_s1 + $0x68] sm:$0xff] (!%p186_p10)   ;;  %s1263_s26 = scalar_lea.hbm (!%p186_p10), %s1314_s4, %s823_s13  ;;  %s695_s29 = scalar_lea.sflag (!%p186_p10), [#allocation4], %s213_s12 }
  0x12   : > { %879 = vmatpush3.bf16.msra.mxu1 (!%p186_p10), %v961_v2  ;;  %v969_v10 = vld [vmem:[%s1311_s1 + $0x18] sm:$0xff] (!%p186_p10)   ;;  %v973_v13 = vld [vmem:[%s1311_s1 + $0xa0] sm:$0xff] (!%p186_p10)   ;;  %v976_v16 = vld [vmem:[%s1311_s1 + $0xa8] sm:$0xff] (!%p186_p10)  }
  0x13   : > { %880 = vmatprep.subr.bf16.mxu1 (!%p186_p10), %v964_v5  ;;  %v970_v11 = vld [vmem:[%s1311_s1 + $0x98] sm:$0xff] (!%p186_p10)   ;;  %v972_v14 = vld [vmem:[%s1311_s1 + $0x20] sm:$0xff] (!%p186_p10)   ;;  %v975_v17 = vld [vmem:[%s1311_s1 + $0x28] sm:$0xff] (!%p186_p10)  }
  0x14   : > { %829 = vmatpush3.bf16.msra.mxu0 (!%p186_p10), %v963_v4  ;;  %v977_v18 = vld [vmem:[%s1311_s1 + $0x70] sm:$0xff] (!%p186_p10)   ;;  %v980_v21 = vld [vmem:[%s1311_s1 + $0x78] sm:$0xff] (!%p186_p10)   ;;  %v821_v44 = vld [vmem:[%s1312_s2] ss:$0 sm:$0xff] (!%p186_p10) }
  0x15   : > { %830 = vmatprep.subr.bf16.mxu0 (!%p186_p10), %v965_v6  ;;  %v978_v19 = vld [vmem:[%s1311_s1 + $0x30] sm:$0xff] (!%p186_p10)   ;;  %v982_v22 = vld [vmem:[%s1311_s1 + $0xb8] sm:$0xff] (!%p186_p10)   ;;  %v822_v48 = vld [vmem:[%s1313_s3] ss:$0 sm:$0xff] (!%p186_p10) }
  0x16   : > { %881 = vmatpush3.bf16.msra.mxu1 %v964_v5  ;;  %s217_s21 = scalar_select %p216_p11, %s1069_s18, 1  ;;  %v979_v20 = vld [vmem:[%s1311_s1 + $0xb0] sm:$0xff]   ;;  %v981_v25 = vld [vmem:[%s1311_s1 + $0x38] sm:$0xff]  }
  0x17   : > { %882 = vmatprep.subr.bf16.mxu1 %v967_v8  ;;  %s1080_s18 = smov [#allocation3]  }
  0x18   : > { %831 = vmatpush3.bf16.msra.mxu0 %v966_v7  ;;  %s902_s6 = smul.u32 96, %s217_s21  ;;  %s707_s21 = sshll.u32 %s214_s14, 4  ;;  %s1265_s21 = int_to_ptr.vmem [resolvable:$true] %s707_s21 }
  0x19   : > { %832 = vmatprep.subr.bf16.mxu0 %v968_v9  ;;  %s999_s30 = scalar_lea.vmem %s1265_s21, 16  ;;  %s1003_s5 = sshll.u32 %s1080_s18, 4  ;;  %s1004_s5 = int_to_ptr.vmem [resolvable:$false] %s1003_s5 }
  0x1a   : > { %883 = vmatpush3.bf16.msra.mxu1 %v967_v8  ;;  %s1229_s24 = scalar_lea.vmem %s1310_s0, %s902_s6  ;;  %p1000_p12 = scmp.ne.s32.totalorder %s1265_s21, %s999_s30 }
  0x1b   : > { %884 = vmatprep.subr.bf16.mxu1 %v970_v11  ;;  %v985_v23 = vld [vmem:[%s1229_s24 + $0x4] ss:$12 sps:$4 sm:$0xff]   ;;  %v986_v24 = vld [vmem:[%s1229_s24 + $0x8] ss:$12 sps:$4 sm:$0xff]   ;;  %v983_v26 = vld [vmem:[%s1229_s24] ss:$12 sps:$4 sm:$0xff]   ;;  %p1006_p1 = scmp.lt.s32.totalorder %s1265_s21, %s1004_s5 }
  0x1c   : > { %833 = vmatpush3.bf16.msra.mxu0 %v969_v10  ;;  %536 = vmatprep.mubr.bf16.mxu0 %v985_v23  ;;  %v988_v27 = vld [vmem:[%s1229_s24 + $0x1c] ss:$12 sps:$4 sm:$0xff]   ;;  %v987_v28 = vld [vmem:[%s1229_s24 + $0x20] ss:$12 sps:$4 sm:$0xff]   ;;  %v994_v29 = vld [vmem:[%s1229_s24 + $0x38] ss:$12 sps:$4 sm:$0xff]   ;;  %p1001_p13 = pnand %p1000_p12, %p1146_p4 }
  0x1d   : > { %834 = vmatprep.subr.bf16.mxu0 %v971_v12  ;;  %894 = vmatprep.mubr.bf16.mxu1 %v986_v24  ;;  %v990_v30 = vld [vmem:[%s1229_s24 + $0x18] ss:$12 sps:$4 sm:$0xff]   ;;  %v991_v31 = vld [vmem:[%s1229_s24 + $0x34] ss:$12 sps:$4 sm:$0xff]   ;;  %v995_v32 = vld [vmem:[%s1229_s24 + $0x50] ss:$12 sps:$4 sm:$0xff]  }
  0x1e   : > { %885 = vmatpush3.bf16.msra.mxu1 %v970_v11  ;;  %v993_v33 = vld [vmem:[%s1229_s24 + $0x30] ss:$12 sps:$4 sm:$0xff]   ;;  %v996_v34 = vld [vmem:[%s1229_s24 + $0x4c] ss:$12 sps:$4 sm:$0xff]   ;;  %v998_v35 = vld [vmem:[%s1229_s24 + $0x48] ss:$12 sps:$4 sm:$0xff]   ;;  %p1002_p0 = pneg %p1001_p13 }
  0x1f   : > { %886 = vmatprep.subr.bf16.mxu1 %v973_v13  ;;  %s1005_s6 = scalar_lea.vmem %s1004_s5, 32 }
  0x20   : > { %835 = vmatpush3.bf16.msra.mxu0 %v972_v14  ;;  %p1007_p2 = scmp.lt.s32.totalorder %s1005_s6, %s999_s30 }
  0x21   : > { %836 = vmatprep.subr.bf16.mxu0 %v974_v15 }
  0x22   : > { %887 = vmatpush3.bf16.msra.mxu1 %v973_v13  ;;  %p1008_p3 = por %p1007_p2, %p1006_p1 }
  0x23   : > { %888 = vmatprep.subr.bf16.mxu1 %v976_v16 }
  0x24   : > { %837 = vmatpush3.bf16.msra.mxu0 %v975_v17  ;;  %p1009_p5 = pnand %p1008_p3, %p1002_p0 }
  0x25   : > { %838 = vmatprep.subr.bf16.mxu0 %v977_v18 }
  0x26   : > { %889 = vmatpush3.bf16.msra.mxu1 %v976_v16 }
  0x27   : > { %890 = vmatprep.subr.bf16.mxu1 %v979_v20 }
  0x28   : > { %839 = vmatpush3.bf16.msra.mxu0 %v978_v19 }
  0x29   : > { %840 = vmatprep.subr.bf16.mxu0 %v980_v21 }
  0x2a   : > { %891 = vmatpush3.bf16.msra.mxu1 %v979_v20 }
  0x2b   : > { %892 = vmatprep.subr.bf16.mxu1 %v982_v22 }
  0x2c   : > { %841 = vmatpush3.bf16.msra.mxu0 %v981_v25 }
  0x2e   : > { %893 = vmatpush3.bf16.msra.mxu1 %v982_v22 }
  0x2f   : > { %537 = vmatmul.mubr.bf16.vlgmr.msra.gmra.mrb[0].mxu0 %v983_v26 }
  0x30   : > { %544 = vmatprep.mubr.bf16.mxu0 %v988_v27 }
  0x31   : > { %895 = vmatmul.mubr.bf16.vlgmr.msra.gmra.mrb[0].mxu1 %v987_v28 }
  0x32   : > { %898 = vmatprep.mubr.bf16.mxu1 %v994_v29 }
  0x37   : > { %545 = vmatmul.mubr.bf16.gmra.mrb[4].mxu0 %v990_v30 }
  0x38   : > { %552 = vmatprep.mubr.bf16.mxu0 %v991_v31 }
  0x39   : > { %899 = vmatmul.mubr.bf16.gmra.mrb[4].mxu1 %v995_v32 }
  0x3f   : > { %553 = vmatmul.mubr.bf16.gmra.mrb[8].mxu0 %v993_v33 }
  0x40   : > { %560 = vmatprep.mubr.bf16.mxu0 %v996_v34 }
  0x47   : > { %561 = vmatmul.mubr.bf16.gmra.mrb[12].mxu0 %v998_v35 }
 0x102   : > { %v842_v37 = vpop.f32.mrb[0].mxu0 }
 0x103   : > { %v843_v38 = vpop.f32.mrb[1].mxu0 }
 0x104   : > { %v844_v39 = vadd.f32 %v843_v38, %v842_v37  ;;  %v845_v40 = vpop.f32.mrb[2].mxu0  ;;  %v896_v41 = vpop.f32.mrb[0].mxu1 }
 0x105   : > { %v846_v42 = vpop.f32.mrb[3].mxu0  ;;  %v603_v43 = vpop.f32.mrb[1].mxu1 }
 0x106   : > { %v847_v45 = vadd.f32 %v846_v42, %v845_v40  ;;  %v604_v46 = vadd.f32 %v844_v39, %v603_v43  ;;  %v897_v47 = vpop.f32.mrb[2].mxu1 }
 0x107   : > { %v606_v49 = vpop.f32.mrb[3].mxu1 }
 0x108   : > { %v641_v50 = vmul.f32 %v821_v44, %v604_v46  ;;  %v607_v51 = vadd.f32 %v847_v45, %v606_v49 }
 0x10a   : > { %v656_v52 = vadd.f32 %v822_v48, %v641_v50  ;;  %v642_v53 = vmul.f32 %v821_v44, %v607_v51  ;;  %v848_v54 = vpop.f32.mrb[4].mxu0 }
 0x10b   : > { %v849_v55 = vpop.f32.mrb[5].mxu0 }
 0x10c   : > { %v657_v56 = vadd.f32 %v822_v48, %v642_v53  ;;  %v850_v57 = vadd.f32 %v849_v55, %v848_v54  ;;  %v851_v58 = vpop.f32.mrb[6].mxu0  ;;  %v900_v59 = vpop.f32.mrb[4].mxu1  ;;  %v664_v62 = vmax.f32 %v656_v52, 0.0  ;;  %v672_v53 = vld [vmem:[#allocation2] sm:$0x1] }
 0x10d   : > { %v852_v60 = vpop.f32.mrb[7].mxu0  ;;  %v619_v61 = vpop.f32.mrb[5].mxu1 }
 0x10e   : > { %v665_v63 = vmax.f32 %v657_v56, 0.0  ;;  %v612_v0 = vadd.f32 %v896_v41, %v850_v57  ;;  %v853_v1 = vadd.f32 %v852_v60, %v851_v58  ;;  %v901_v2 = vpop.f32.mrb[6].mxu1 }
 0x10f   : > { %v622_v3 = vpop.f32.mrb[7].mxu1 }
 0x110   : > { %v673_v4 = vadd.f32 %v665_v63, %v664_v62  ;;  %v643_v5 = vmul.f32 %v821_v44, %v612_v0  ;;  %v615_v6 = vadd.f32 %v897_v47, %v853_v1 }
 0x112   : > { %v658_v7 = vadd.f32 %v822_v48, %v643_v5  ;;  %v644_v8 = vmul.f32 %v821_v44, %v615_v6  ;;  %v854_v9 = vpop.f32.mrb[8].mxu0 }
 0x113   : > { %v855_v10 = vpop.f32.mrb[9].mxu0 }
 0x114   : > { %v666_v11 = vmax.f32 %v658_v7, 0.0  ;;  %v659_v12 = vadd.f32 %v822_v48, %v644_v8  ;;  %v856_v13 = vadd.f32 %v855_v10, %v854_v9  ;;  %v857_v14 = vpop.f32.mrb[10].mxu0 }
 0x115   : > { %v858_v15 = vpop.f32.mrb[11].mxu0 }
 0x116   : > { %v674_v16 = vadd.f32 %v673_v4, %v666_v11  ;;  %v667_v17 = vmax.f32 %v659_v12, 0.0  ;;  %v859_v18 = vadd.f32 %v858_v15, %v857_v14  ;;  %v620_v19 = vadd.f32 %v856_v13, %v619_v61 }
 0x118   : > { %v645_v20 = vmul.f32 %v821_v44, %v620_v19  ;;  %v675_v21 = vadd.f32 %v674_v16, %v667_v17  ;;  %v623_v22 = vadd.f32 %v859_v18, %v622_v3 }
 0x11a   : > { %v660_v23 = vadd.f32 %v822_v48, %v645_v20  ;;  %v646_v24 = vmul.f32 %v821_v44, %v623_v22  ;;  %v860_v25 = vpop.f32.mrb[12].mxu0 }
 0x11b   : > { %v861_v26 = vpop.f32.mrb[13].mxu0 }
 0x11c   : > { %v668_v27 = vmax.f32 %v660_v23, 0.0  ;;  %v661_v28 = vadd.f32 %v822_v48, %v646_v24  ;;  %v862_v29 = vadd.f32 %v861_v26, %v860_v25  ;;  %v863_v30 = vpop.f32.mrb[14].mxu0 }
 0x11d   : > { %v864_v31 = vpop.f32.mrb[15].mxu0 }
 0x11e   : > { %v676_v32 = vadd.f32 %v675_v21, %v668_v27  ;;  %v669_v33 = vmax.f32 %v661_v28, 0.0  ;;  %v628_v34 = vadd.f32 %v900_v59, %v862_v29  ;;  %v865_v35 = vadd.f32 %v864_v31, %v863_v30 }
 0x120   : > { %v677_v36 = vadd.f32 %v676_v32, %v669_v33  ;;  %v647_v37 = vmul.f32 %v821_v44, %v628_v34  ;;  %v631_v38 = vadd.f32 %v901_v2, %v865_v35 }
 0x122   : > { %v662_v39 = vadd.f32 %v822_v48, %v647_v37  ;;  %v648_v40 = vmul.f32 %v821_v44, %v631_v38 }
 0x124   : > { %v670_v41 = vmax.f32 %v662_v39, 0.0  ;;  %v663_v42 = vadd.f32 %v822_v48, %v648_v40 }
 0x126   : > { %v678_v43 = vadd.f32 %v677_v36, %v670_v41  ;;  %v671_v45 = vmax.f32 %v663_v42, 0.0 }
 0x128   : > { %v679_v46 = vadd.f32 %v678_v43, %v671_v45 }
 0x12a   : > { %v680_v47 = vrot.slane %v679_v46, 4 }
 0x12c   : > { %v681_v49 = vadd.f32 %v680_v47, %v679_v46 }
 0x12e   : > { %v682_v50 = vrot.slane %v681_v49, 2 }
 0x130   : > { %v683_v51 = vadd.f32 %v682_v50, %v681_v49 }
 0x132   : > { %v684_v52 = vrot.slane %v683_v51, 1 }
 0x134   : > { %v685_v54 = vadd.f32 %v684_v52, %v683_v51 }
 0x136   : > { %v686_v55 = vadd.f32 %v685_v54, %v672_v53 }
 0x138   : > { %687 = vst [vmem:[#allocation2] sm:$0x1] %v686_v55 }
 0x13f   : > { %v691_v44 = vld [vmem:[#allocation2] sm:$0x1] }
 0x140   : > { %v692_v56 = vmul.f32 0.015625, %v691_v44 }
 0x142   : > { %693 = vst [vmem:[%s214_s14] sm:$0x1] %v692_v56 }
 0x143   : > { %1012 = shalt.err (!%p1009_p5)
}
 0x144   : > { %s1013_s7 = scalar_lea.hbm %s1263_s26, 16  ;;  %s1017_s10 = scalar_lea.hbm %s1314_s4, 32 }
 0x145   : > { %p1014_p6 = scmp.ne.s32.totalorder %s1263_s26, %s1013_s7  ;;  %p1018_p10 = scmp.lt.u32.totalorder %s1263_s26, %s1314_s4 }
 0x146   : > { %p1019_p11 = scmp.lt.u32.totalorder %s1017_s10, %s1013_s7  ;;  %p1021_p13 = scmp.lt.u32.totalorder %s1013_s7, %s1263_s26 }
 0x147   : > { %p1015_p7 = pnand %p1014_p6, %p1146_p4 }
 0x148   : > { %p1020_p12 = por %p1019_p11, %p1018_p10 }
 0x149   : > { %p1016_p9 = pneg %p1015_p7 }
 0x14a   : > { %p1022_p0 = por %p1021_p13, %p1020_p12 }
 0x14c   : > { %p1023_p1 = pnand %p1022_p0, %p1016_p9 }
 0x14e   : > { %1026 = shalt.err (!%p1023_p1)
}
 0x14f   : > { %903 = dma.vmem_to_hbm [thread:$0]  (%p1146_p4), %s1265_s21, 16, %s1263_s26, %s695_s29  }
 0x150 PF: > { %p909_p2 = scmp.ge.s32.totalorder %s1077_s20, 2  ;;  %s719_s13 = sand.u32 1, %s1057_s15  }
 0x151   : > { %s720_s14 = scalar_lea.sflag [#allocation4], %s719_s13 }
 0x152   : > { %p906_p3 = pnand %p909_p2, %p1153_p8 }
 0x154   : > { %1052 = dma.done.wait (!%p906_p3), %s720_s14, 16  }
 0x155   : > { %1054 = vsyncadd (!%p906_p3), %s720_s14, 4294967280  ;;  %s17_s20 = sadd.s32 1, %s1077_s20   ;;  %s1317_s15 = smov %s1061_s16 }
 0x156   : > { %p14_p5 = scmp.ge.s32.totalorder %s17_s20, 4   ;;  %s1318_s16 = smov %s1065_s17 }
 0x157   : > { %s1319_s17 = smov %s1159_s28  ;;  %s1320_s18 = smov %s1073_s19 }
 0x158   : > { %s1321_s19 = smov %s1323_s23  ;;  %16 = sbr.rel (!%p14_p5) target bundleno = 4 (0x4), region = 79 }
 0x15f   :  { %724 = vsyncpa [#allocation4], 1 }
 0x160   :  { %726 = vsyncpa [#allocation4 + $0x1], 1 }

</bundles_post_ra>
